<compile_context>
chip_gen: v6e
topology: v6e:2x2x1
jax: 0.10.0
libtpu: 0.0.40
codegen_flags: <defaults>
</compile_context>

<pallas_src>
import functools

import jax
import jax.numpy as jnp
from jax import lax
from jax.experimental import pallas as pl
from jax.experimental.pallas import tpu as pltpu


def _newton_rootfind_kernel(z0_ref, x_ref, wh_ref, wl_ref, b_ref, out_ref, *,
                            max_iter: int, tol: float, neumann_iters: int):
    """Newton root-find for f(z) = tanh(z W^T + b + x) - z on one row tile.

    W arrives pre-split into bf16 hi/lo parts (W ~= Wh + Wl).  The residual
    matmul is a compensated bf16x3 product (f32 accumulation); the Neumann
    inner solve uses plain bf16 (Wh only) since it only needs an inexact
    search direction.
    """
    z0 = z0_ref[...]                       # (T, PD) f32
    Wh = wh_ref[...]                       # (PD, PD) bf16, block-diag W (hi part)
    Wl = wl_ref[...]                       # (PD, PD) bf16, W - Wh (lo part)
    bx = x_ref[...] + b_ref[...]           # hoisted invariant: bias + x, (T, PD)
    tol2 = jnp.float32(tol) * jnp.float32(tol)
    dims = (((1,), (1,)), ((), ()))        # contract lane axis of z with cols of W

    def zwt_f32(z):
        # Compensated bf16x3 emulation of the f32 product z @ W^T:
        # 3 bf16 MXU passes instead of the 3-6 an f32 matmul lowers to.
        z_hi = z.astype(jnp.bfloat16)
        z_lo = (z - z_hi.astype(jnp.float32)).astype(jnp.bfloat16)
        u = lax.dot_general(z_hi, Wh, dims, preferred_element_type=jnp.float32)
        u = u + lax.dot_general(z_lo, Wh, dims, preferred_element_type=jnp.float32)
        u = u + lax.dot_general(z_hi, Wl, dims, preferred_element_type=jnp.float32)
        return u

    def newton_step(z, want_res):
        u = zwt_f32(z) + bx
        t = jnp.tanh(u)
        fz = t - z                         # residual (T, PD)
        s = 1.0 - t * t                    # sech^2(u)

        # Inexact Newton: solve (I - diag(s) W) g = fz with a short Neumann
        # recurrence g_{k+1} = s * (g_k W^T) + fz  (needs ||diag(s) W|| < 1).
        def neumann_body(_, g):
            gw = lax.dot_general(g.astype(jnp.bfloat16), Wh, dims,
                                 preferred_element_type=jnp.float32)
            return s * gw + fz

        g = lax.fori_loop(0, neumann_iters, neumann_body, fz, unroll=True)

        if want_res:
            # Max packed-row squared L2 norm upper-bounds every original row's
            # ||f||^2, so stopping on it is at least as strict as the
            # reference per-row tolerance (no sqrt needed).
            res2 = jnp.max(jnp.sum(fz * fz, axis=1, keepdims=True))
        else:
            res2 = None
        return z + g, res2

    def cond(carry):
        i, _, res2 = carry
        return jnp.logical_and(i < max_iter, res2 >= tol2)

    def body(carry):
        i, z, _ = carry
        # Two Newton steps per scalar convergence check: halves the XLU
        # cross-lane reduce + vector->scalar sync bubble that feeds the while
        # cond.  Newton converges quadratically, so at most one cheap extra
        # step is ever paid.
        z, _ = newton_step(z, want_res=False)
        z, res2 = newton_step(z, want_res=True)
        return i + 2, z, res2

    _, z_root, _ = lax.while_loop(
        cond, body, (jnp.int32(0), z0, jnp.float32(jnp.inf)))
    out_ref[...] = z_root


def _default_lane_width():
    """256-lane packing fills the 256-wide MXU on v6e/v7x; 128 elsewhere."""
    try:
        kind = jax.devices()[0].device_kind.lower()
    except Exception:
        return 128
    return 256 if ("v6" in kind or "v7" in kind) else 128


def root_find(z0, x, W, b, *, solver_fwd_max_iter=30, solver_fwd_tol=1e-4,
              tile_rows=512, neumann_iters=6, lane_width=None):
    """Eval-mode RootFind.forward: returns z* with f(z*, x) ~= 0 (Newton).

    Assumes the Jacobian contraction ||diag(1 - tanh^2) W|| < 1 so the Neumann
    inner solve converges (standard DEQ-style well-posed f).
    """
    # TODO(synk): training-mode implicit-diff backward hook (autograd.grad +
    # register_hook) is gradient-only machinery with no forward-kernel analog.
    N, D = z0.shape
    f32 = jnp.float32
    bf16 = jnp.bfloat16
    z0 = z0.astype(f32)
    x = x.astype(f32)
    W = W.astype(f32)
    b = jnp.reshape(b, (1, D)).astype(f32)

    # Lane packing: place P independent D-wide rows side by side on the lane
    # axis (PD = 256 fills the 256-wide MXU on v6e/v7x, 128 on v5e); W becomes
    # block-diagonal so each lane group sees its own copy.
    if lane_width is None:
        lane_width = _default_lane_width()
    P = max(1, lane_width // D)
    PD = P * D
    NP = -(-N // P)                              # number of packed rows

    # Row tiling: large tiles amortize per-grid-step pipeline overhead; keep
    # at least two tiles (when there is enough work) so the parallel grid axis
    # can shard across the two TensorCores on v7x.
    T = min(tile_rows, NP)
    if NP >= 16:
        half = ((-(-NP // 2)) + 7) // 8 * 8
        T = min(T, half)
    if T < NP:
        T = max(8, (T // 8) * 8)                 # tiled blocks: sublane aligned
    NPp = -(-NP // T) * T
    num_tiles = NPp // T

    # Pad in the (N, D) domain.  z0 pads with 0 and x with -b so every padded
    # row satisfies f(0) = tanh(0 + b - b) = 0 exactly and never blocks a
    # tile's early exit.
    N_total = NPp * P
    if N_total > N:
        pad = N_total - N
        z0 = jnp.concatenate([z0, jnp.zeros((pad, D), f32)], axis=0)
        x = jnp.concatenate([x, jnp.broadcast_to(-b, (pad, D))], axis=0)
    zp = z0.reshape(NPp, PD)
    xp = x.reshape(NPp, PD)

    # Block-diagonal W, pre-split into bf16 hi/lo halves once on the host.
    # Both stay resident in VMEM (constant index_map), so the kernel does no
    # per-tile W casts at all.
    W_block = jnp.kron(jnp.eye(P, dtype=f32), W)          # (PD, PD)
    W_hi = W_block.astype(bf16)
    W_lo = (W_block - W_hi.astype(f32)).astype(bf16)
    b_block = jnp.tile(b, (1, P))                         # (1, PD)

    kernel = functools.partial(_newton_rootfind_kernel,
                               max_iter=solver_fwd_max_iter,
                               tol=float(solver_fwd_tol),
                               neumann_iters=neumann_iters)

    out = pl.pallas_call(
        kernel,
        out_shape=jax.ShapeDtypeStruct((NPp, PD), f32),
        grid=(num_tiles,),
        in_specs=[
            pl.BlockSpec((T, PD), lambda i: (i, 0)),      # z0 tile
            pl.BlockSpec((T, PD), lambda i: (i, 0)),      # x tile
            pl.BlockSpec((PD, PD), lambda i: (0, 0)),     # W hi (resident, bf16)
            pl.BlockSpec((PD, PD), lambda i: (0, 0)),     # W lo (resident, bf16)
            pl.BlockSpec((1, PD), lambda i: (0, 0)),      # bias (resident)
        ],
        out_specs=pl.BlockSpec((T, PD), lambda i: (i, 0)),
        compiler_params=pltpu.CompilerParams(
            dimension_semantics=("parallel",),
            vmem_limit_bytes=32 * 1024 * 1024),
    )(zp, xp, W_hi, W_lo, b_block)

    return out.reshape(N_total, D)[:N]


if __name__ == "__main__":
    key = jax.random.PRNGKey(0)
    k_w, k_b, k_x, k_z = jax.random.split(key, 4)

    B, S, D = 2, 8, 32          # batch=2, seq=8, hidden=32
    N = B * S                   # rows of the (N, D) layout

    # Deterministic parameter init; scale W so the Jacobian stays nonsingular
    # and diag(s) W is a contraction (Neumann solve converges).
    W = 0.3 * jax.random.normal(k_w, (D, D), jnp.float32) / jnp.sqrt(D)
    bias = 0.1 * jax.random.normal(k_b, (1, D), jnp.float32)

    x = jax.random.normal(k_x, (B, S, D), jnp.float32).reshape(N, D)
    z0 = 0.01 * jax.random.normal(k_z, (B, S, D), jnp.float32).reshape(N, D)

    z_root = root_find(z0, x, W, bias)
    z_root = jax.block_until_ready(z_root)

    # Sanity check: z* really is a root of f(z, x) = tanh(z W^T + b + x) - z.
    u = z_root @ W.T + bias + x
    residual = jnp.max(jnp.sqrt(jnp.sum((jnp.tanh(u) - z_root) ** 2, axis=1)))
    assert bool(jnp.isfinite(z_root).all()), "non-finite output"
    assert float(residual) < 1e-3, f"root residual too large: {residual}"

    print("KERNEL_OK")
</pallas_src>

<mosaic_0001>
module attributes {stable_mosaic.version = 11 : i64} {
  func.func @_newton_rootfind_kernel(%arg0: i32, %arg1: memref<4x128xf32, #tpu.memory_space<vmem>>, %arg2: memref<4x128xf32, #tpu.memory_space<vmem>>, %arg3: memref<128x128xbf16, #tpu.memory_space<vmem>>, %arg4: memref<128x128xbf16, #tpu.memory_space<vmem>>, %arg5: memref<1x128xf32, #tpu.memory_space<vmem>>, %arg6: memref<4x128xf32, #tpu.memory_space<vmem>>) attributes {dimension_semantics = [#tpu.dimension_semantics<parallel>], iteration_bounds = array<i64: 1>, scalar_prefetch = 0 : i64, scratch_operands = 0 : i64, tpu.core_type = #tpu.core_type<tc>, window_params = [{transform_indices = @transform_0, window_bounds = array<i64: 4, 128>}, {transform_indices = @transform_1, window_bounds = array<i64: 4, 128>}, {pipeline_mode = #tpu.pipeline_mode<synchronous>, transform_indices = @transform_2, window_bounds = array<i64: 128, 128>}, {pipeline_mode = #tpu.pipeline_mode<synchronous>, transform_indices = @transform_3, window_bounds = array<i64: 128, 128>}, {pipeline_mode = #tpu.pipeline_mode<synchronous>, transform_indices = @transform_4, window_bounds = array<i64: 1, 128>}, {transform_indices = @transform_5, window_bounds = array<i64: 4, 128>}]} {
    %c0 = arith.constant 0 : index
    %c0_0 = arith.constant 0 : index
    %0 = vector.load %arg1[%c0, %c0_0] : memref<4x128xf32, #tpu.memory_space<vmem>>, vector<4x128xf32>
    %c0_1 = arith.constant 0 : index
    %c0_2 = arith.constant 0 : index
    %1 = vector.load %arg3[%c0_1, %c0_2] : memref<128x128xbf16, #tpu.memory_space<vmem>>, vector<128x128xbf16>
    %c0_3 = arith.constant 0 : index
    %c0_4 = arith.constant 0 : index
    %2 = vector.load %arg4[%c0_3, %c0_4] : memref<128x128xbf16, #tpu.memory_space<vmem>>, vector<128x128xbf16>
    %c0_5 = arith.constant 0 : index
    %c0_6 = arith.constant 0 : index
    %3 = vector.load %arg2[%c0_5, %c0_6] : memref<4x128xf32, #tpu.memory_space<vmem>>, vector<4x128xf32>
    %c0_7 = arith.constant 0 : index
    %c0_8 = arith.constant 0 : index
    %4 = vector.load %arg5[%c0_7, %c0_8] : memref<1x128xf32, #tpu.memory_space<vmem>>, vector<1x128xf32>
    %5 = vector.broadcast %4 : vector<1x128xf32> to vector<4x128xf32>
    %6 = arith.addf %3, %5 : vector<4x128xf32>
    %cst = arith.constant 9.99999974E-5 : f32
    %cst_9 = arith.constant 9.99999974E-5 : f32
    %7 = arith.mulf %cst, %cst_9 : f32
    %c0_i32 = arith.constant 0 : i32
    %cst_10 = arith.constant 0x7F800000 : f32
    %8:3 = scf.while (%arg7 = %c0_i32, %arg8 = %0, %arg9 = %cst_10) : (i32, vector<4x128xf32>, f32) -> (i32, vector<4x128xf32>, f32) {
      %c30_i32 = arith.constant 30 : i32
      %10 = arith.cmpi slt, %arg7, %c30_i32 : i32
      %11 = arith.cmpf oge, %arg9, %7 : f32
      %12 = arith.andi %10, %11 : i1
      scf.condition(%12) %arg7, %arg8, %arg9 : i32, vector<4x128xf32>, f32
    } do {
    ^bb0(%arg7: i32, %arg8: vector<4x128xf32>, %arg9: f32):
      %10 = arith.truncf %arg8 : vector<4x128xf32> to vector<4x128xbf16>
      %11 = arith.extf %10 : vector<4x128xbf16> to vector<4x128xf32>
      %12 = arith.subf %arg8, %11 : vector<4x128xf32>
      %13 = arith.truncf %12 : vector<4x128xf32> to vector<4x128xbf16>
      %cst_13 = arith.constant dense<0.000000e+00> : vector<4x128xf32>
      %14 = tpu.matmul %10, %1, %cst_13 {dimension_numbers = #tpu.dot_dimension_numbers<[1], [1], [0], [0], [0, 0, 1, 0], [], []>} : vector<4x128xbf16>, vector<128x128xbf16>, vector<4x128xf32> -> vector<4x128xf32>
      %cst_14 = arith.constant dense<0.000000e+00> : vector<4x128xf32>
      %15 = tpu.matmul %13, %1, %cst_14 {dimension_numbers = #tpu.dot_dimension_numbers<[1], [1], [0], [0], [0, 0, 1, 0], [], []>} : vector<4x128xbf16>, vector<128x128xbf16>, vector<4x128xf32> -> vector<4x128xf32>
      %16 = arith.addf %14, %15 : vector<4x128xf32>
      %cst_15 = arith.constant dense<0.000000e+00> : vector<4x128xf32>
      %17 = tpu.matmul %10, %2, %cst_15 {dimension_numbers = #tpu.dot_dimension_numbers<[1], [1], [0], [0], [0, 0, 1, 0], [], []>} : vector<4x128xbf16>, vector<128x128xbf16>, vector<4x128xf32> -> vector<4x128xf32>
      %18 = arith.addf %16, %17 : vector<4x128xf32>
      %19 = arith.addf %18, %6 : vector<4x128xf32>
      %20 = math.tanh %19 : vector<4x128xf32>
      %21 = arith.subf %20, %arg8 : vector<4x128xf32>
      %22 = arith.mulf %20, %20 : vector<4x128xf32>
      %cst_16 = arith.constant 1.000000e+00 : f32
      %23 = vector.broadcast %cst_16 : f32 to vector<4x128xf32>
      %24 = arith.subf %23, %22 : vector<4x128xf32>
      %c0_i32_17 = arith.constant 0 : i32
      %25 = arith.truncf %21 : vector<4x128xf32> to vector<4x128xbf16>
      %cst_18 = arith.constant dense<0.000000e+00> : vector<4x128xf32>
      %26 = tpu.matmul %25, %1, %cst_18 {dimension_numbers = #tpu.dot_dimension_numbers<[1], [1], [0], [0], [0, 0, 1, 0], [], []>} : vector<4x128xbf16>, vector<128x128xbf16>, vector<4x128xf32> -> vector<4x128xf32>
      %27 = arith.mulf %24, %26 : vector<4x128xf32>
      %28 = arith.addf %27, %21 : vector<4x128xf32>
      %c1_i32 = arith.constant 1 : i32
      %29 = arith.truncf %28 : vector<4x128xf32> to vector<4x128xbf16>
      %cst_19 = arith.constant dense<0.000000e+00> : vector<4x128xf32>
      %30 = tpu.matmul %29, %1, %cst_19 {dimension_numbers = #tpu.dot_dimension_numbers<[1], [1], [0], [0], [0, 0, 1, 0], [], []>} : vector<4x128xbf16>, vector<128x128xbf16>, vector<4x128xf32> -> vector<4x128xf32>
      %31 = arith.mulf %24, %30 : vector<4x128xf32>
      %32 = arith.addf %31, %21 : vector<4x128xf32>
      %c2_i32 = arith.constant 2 : i32
      %33 = arith.truncf %32 : vector<4x128xf32> to vector<4x128xbf16>
      %cst_20 = arith.constant dense<0.000000e+00> : vector<4x128xf32>
      %34 = tpu.matmul %33, %1, %cst_20 {dimension_numbers = #tpu.dot_dimension_numbers<[1], [1], [0], [0], [0, 0, 1, 0], [], []>} : vector<4x128xbf16>, vector<128x128xbf16>, vector<4x128xf32> -> vector<4x128xf32>
      %35 = arith.mulf %24, %34 : vector<4x128xf32>
      %36 = arith.addf %35, %21 : vector<4x128xf32>
      %c3_i32 = arith.constant 3 : i32
      %37 = arith.truncf %36 : vector<4x128xf32> to vector<4x128xbf16>
      %cst_21 = arith.constant dense<0.000000e+00> : vector<4x128xf32>
      %38 = tpu.matmul %37, %1, %cst_21 {dimension_numbers = #tpu.dot_dimension_numbers<[1], [1], [0], [0], [0, 0, 1, 0], [], []>} : vector<4x128xbf16>, vector<128x128xbf16>, vector<4x128xf32> -> vector<4x128xf32>
      %39 = arith.mulf %24, %38 : vector<4x128xf32>
      %40 = arith.addf %39, %21 : vector<4x128xf32>
      %c4_i32 = arith.constant 4 : i32
      %41 = arith.truncf %40 : vector<4x128xf32> to vector<4x128xbf16>
      %cst_22 = arith.constant dense<0.000000e+00> : vector<4x128xf32>
      %42 = tpu.matmul %41, %1, %cst_22 {dimension_numbers = #tpu.dot_dimension_numbers<[1], [1], [0], [0], [0, 0, 1, 0], [], []>} : vector<4x128xbf16>, vector<128x128xbf16>, vector<4x128xf32> -> vector<4x128xf32>
      %43 = arith.mulf %24, %42 : vector<4x128xf32>
      %44 = arith.addf %43, %21 : vector<4x128xf32>
      %c5_i32 = arith.constant 5 : i32
      %45 = arith.truncf %44 : vector<4x128xf32> to vector<4x128xbf16>
      %cst_23 = arith.constant dense<0.000000e+00> : vector<4x128xf32>
      %46 = tpu.matmul %45, %1, %cst_23 {dimension_numbers = #tpu.dot_dimension_numbers<[1], [1], [0], [0], [0, 0, 1, 0], [], []>} : vector<4x128xbf16>, vector<128x128xbf16>, vector<4x128xf32> -> vector<4x128xf32>
      %47 = arith.mulf %24, %46 : vector<4x128xf32>
      %48 = arith.addf %47, %21 : vector<4x128xf32>
      %c6_i32 = arith.constant 6 : i32
      %49 = arith.addf %arg8, %48 : vector<4x128xf32>
      %50 = arith.truncf %49 : vector<4x128xf32> to vector<4x128xbf16>
      %51 = arith.extf %50 : vector<4x128xbf16> to vector<4x128xf32>
      %52 = arith.subf %49, %51 : vector<4x128xf32>
      %53 = arith.truncf %52 : vector<4x128xf32> to vector<4x128xbf16>
      %cst_24 = arith.constant dense<0.000000e+00> : vector<4x128xf32>
      %54 = tpu.matmul %50, %1, %cst_24 {dimension_numbers = #tpu.dot_dimension_numbers<[1], [1], [0], [0], [0, 0, 1, 0], [], []>} : vector<4x128xbf16>, vector<128x128xbf16>, vector<4x128xf32> -> vector<4x128xf32>
      %cst_25 = arith.constant dense<0.000000e+00> : vector<4x128xf32>
      %55 = tpu.matmul %53, %1, %cst_25 {dimension_numbers = #tpu.dot_dimension_numbers<[1], [1], [0], [0], [0, 0, 1, 0], [], []>} : vector<4x128xbf16>, vector<128x128xbf16>, vector<4x128xf32> -> vector<4x128xf32>
      %56 = arith.addf %54, %55 : vector<4x128xf32>
      %cst_26 = arith.constant dense<0.000000e+00> : vector<4x128xf32>
      %57 = tpu.matmul %50, %2, %cst_26 {dimension_numbers = #tpu.dot_dimension_numbers<[1], [1], [0], [0], [0, 0, 1, 0], [], []>} : vector<4x128xbf16>, vector<128x128xbf16>, vector<4x128xf32> -> vector<4x128xf32>
      %58 = arith.addf %56, %57 : vector<4x128xf32>
      %59 = arith.addf %58, %6 : vector<4x128xf32>
      %60 = math.tanh %59 : vector<4x128xf32>
      %61 = arith.subf %60, %49 : vector<4x128xf32>
      %62 = arith.mulf %60, %60 : vector<4x128xf32>
      %cst_27 = arith.constant 1.000000e+00 : f32
      %63 = vector.broadcast %cst_27 : f32 to vector<4x128xf32>
      %64 = arith.subf %63, %62 : vector<4x128xf32>
      %c0_i32_28 = arith.constant 0 : i32
      %65 = arith.truncf %61 : vector<4x128xf32> to vector<4x128xbf16>
      %cst_29 = arith.constant dense<0.000000e+00> : vector<4x128xf32>
      %66 = tpu.matmul %65, %1, %cst_29 {dimension_numbers = #tpu.dot_dimension_numbers<[1], [1], [0], [0], [0, 0, 1, 0], [], []>} : vector<4x128xbf16>, vector<128x128xbf16>, vector<4x128xf32> -> vector<4x128xf32>
      %67 = arith.mulf %64, %66 : vector<4x128xf32>
      %68 = arith.addf %67, %61 : vector<4x128xf32>
      %c1_i32_30 = arith.constant 1 : i32
      %69 = arith.truncf %68 : vector<4x128xf32> to vector<4x128xbf16>
      %cst_31 = arith.constant dense<0.000000e+00> : vector<4x128xf32>
      %70 = tpu.matmul %69, %1, %cst_31 {dimension_numbers = #tpu.dot_dimension_numbers<[1], [1], [0], [0], [0, 0, 1, 0], [], []>} : vector<4x128xbf16>, vector<128x128xbf16>, vector<4x128xf32> -> vector<4x128xf32>
      %71 = arith.mulf %64, %70 : vector<4x128xf32>
      %72 = arith.addf %71, %61 : vector<4x128xf32>
      %c2_i32_32 = arith.constant 2 : i32
      %73 = arith.truncf %72 : vector<4x128xf32> to vector<4x128xbf16>
      %cst_33 = arith.constant dense<0.000000e+00> : vector<4x128xf32>
      %74 = tpu.matmul %73, %1, %cst_33 {dimension_numbers = #tpu.dot_dimension_numbers<[1], [1], [0], [0], [0, 0, 1, 0], [], []>} : vector<4x128xbf16>, vector<128x128xbf16>, vector<4x128xf32> -> vector<4x128xf32>
      %75 = arith.mulf %64, %74 : vector<4x128xf32>
      %76 = arith.addf %75, %61 : vector<4x128xf32>
      %c3_i32_34 = arith.constant 3 : i32
      %77 = arith.truncf %76 : vector<4x128xf32> to vector<4x128xbf16>
      %cst_35 = arith.constant dense<0.000000e+00> : vector<4x128xf32>
      %78 = tpu.matmul %77, %1, %cst_35 {dimension_numbers = #tpu.dot_dimension_numbers<[1], [1], [0], [0], [0, 0, 1, 0], [], []>} : vector<4x128xbf16>, vector<128x128xbf16>, vector<4x128xf32> -> vector<4x128xf32>
      %79 = arith.mulf %64, %78 : vector<4x128xf32>
      %80 = arith.addf %79, %61 : vector<4x128xf32>
      %c4_i32_36 = arith.constant 4 : i32
      %81 = arith.truncf %80 : vector<4x128xf32> to vector<4x128xbf16>
      %cst_37 = arith.constant dense<0.000000e+00> : vector<4x128xf32>
      %82 = tpu.matmul %81, %1, %cst_37 {dimension_numbers = #tpu.dot_dimension_numbers<[1], [1], [0], [0], [0, 0, 1, 0], [], []>} : vector<4x128xbf16>, vector<128x128xbf16>, vector<4x128xf32> -> vector<4x128xf32>
      %83 = arith.mulf %64, %82 : vector<4x128xf32>
      %84 = arith.addf %83, %61 : vector<4x128xf32>
      %c5_i32_38 = arith.constant 5 : i32
      %85 = arith.truncf %84 : vector<4x128xf32> to vector<4x128xbf16>
      %cst_39 = arith.constant dense<0.000000e+00> : vector<4x128xf32>
      %86 = tpu.matmul %85, %1, %cst_39 {dimension_numbers = #tpu.dot_dimension_numbers<[1], [1], [0], [0], [0, 0, 1, 0], [], []>} : vector<4x128xbf16>, vector<128x128xbf16>, vector<4x128xf32> -> vector<4x128xf32>
      %87 = arith.mulf %64, %86 : vector<4x128xf32>
      %88 = arith.addf %87, %61 : vector<4x128xf32>
      %c6_i32_40 = arith.constant 6 : i32
      %89 = arith.mulf %61, %61 : vector<4x128xf32>
      %cst_41 = arith.constant dense<0.000000e+00> : vector<4xf32>
      %90 = vector.multi_reduction <add>, %89, %cst_41 [1] : vector<4x128xf32> to vector<4xf32>
      %91 = vector.shape_cast %90 : vector<4xf32> to vector<4x1xf32>
      %92 = vector.shape_cast %91 : vector<4x1xf32> to vector<1x4x1xf32>
      %cst_42 = arith.constant dense<0xFF800000> : vector<1xf32>
      %93 = vector.multi_reduction <maximumf>, %92, %cst_42 [1, 2] : vector<1x4x1xf32> to vector<1xf32>
      %94 = vector.shape_cast %93 : vector<1xf32> to vector<1x1x1xf32>
      %95 = vector.extract %94[0, 0, 0] : f32 from vector<1x1x1xf32>
      %96 = arith.addf %49, %88 : vector<4x128xf32>
      %c2_i32_43 = arith.constant 2 : i32
      %97 = arith.addi %arg7, %c2_i32_43 : i32
      scf.yield %97, %96, %95 : i32, vector<4x128xf32>, f32
    }
    %c0_11 = arith.constant 0 : index
    %c0_12 = arith.constant 0 : index
    %9 = vector.load %arg6[%c0_11, %c0_12] : memref<4x128xf32, #tpu.memory_space<vmem>>, vector<4x128xf32>
    tpu.vector_store %arg6[%c0_11, %c0_12], %8#1 {strides = array<i32>} : memref<4x128xf32, #tpu.memory_space<vmem>>, vector<4x128xf32>,
    return
  }
  func.func @transform_0(%arg0: i32) -> (i32, i32) {
    %c0_i32 = arith.constant 0 : i32
    %c0_i32_0 = arith.constant 0 : i32
    return %arg0, %c0_i32 : i32, i32
  }
  func.func @transform_1(%arg0: i32) -> (i32, i32) {
    %c0_i32 = arith.constant 0 : i32
    %c0_i32_0 = arith.constant 0 : i32
    return %arg0, %c0_i32 : i32, i32
  }
  func.func @transform_2(%arg0: i32) -> (i32, i32) {
    %c0_i32 = arith.constant 0 : i32
    %c0_i32_0 = arith.constant 0 : i32
    %c0_i32_1 = arith.constant 0 : i32
    return %c0_i32, %c0_i32_0 : i32, i32
  }
  func.func @transform_3(%arg0: i32) -> (i32, i32) {
    %c0_i32 = arith.constant 0 : i32
    %c0_i32_0 = arith.constant 0 : i32
    %c0_i32_1 = arith.constant 0 : i32
    return %c0_i32, %c0_i32_0 : i32, i32
  }
  func.func @transform_4(%arg0: i32) -> (i32, i32) {
    %c0_i32 = arith.constant 0 : i32
    %c0_i32_0 = arith.constant 0 : i32
    %c0_i32_1 = arith.constant 0 : i32
    return %c0_i32, %c0_i32_0 : i32, i32
  }
  func.func @transform_5(%arg0: i32) -> (i32, i32) {
    %c0_i32 = arith.constant 0 : i32
    %c0_i32_0 = arith.constant 0 : i32
    return %arg0, %c0_i32 : i32, i32
  }
}

</mosaic_0001>

<bundles_post_ra>
// kernel: tpu_custom_call.1
= control target key start
LH: loop header
LB: loop body
LE: loop exit
PB: predicated region body
PF: predicated region fallthrough
CT: control target
= control target key end

     0   :  { %10 = vsyncpa [#allocation3], 0  ;;  %s2319_s0 = inlined_call_operand.hbm [shape: f32[4,128], index: 0, kind: input, shape index: {}]   ;;  %s2320_s1 = inlined_call_operand.hbm [shape: f32[4,128], index: 1, kind: input, shape index: {}]   ;;  %s2321_s2 = inlined_call_operand.hbm [shape: bf16[128,128], index: 2, kind: input, shape index: {}]   ;;  %s2322_s3 = inlined_call_operand.hbm [shape: bf16[128,128], index: 3, kind: input, shape index: {}]   ;;  %s2323_s4 = inlined_call_operand.vmem [shape: f32[1,128], index: 4, kind: input, shape index: {}]   ;;  %s2324_s5 = inlined_call_operand.hbm [shape: f32[4,128], index: 5, kind: output, shape index: {}]  }
   0x1   :  { %11 = vsyncpa [#allocation6], 0 }
   0x2   :  { %12 = vsyncpa [#allocation9], 0 }
   0x3   :  { %13 = vsyncpa [#allocation4], 0  ;;  %s1736_s18 = smov [#allocation5]   ;;  %s1737_s20 = smov [#allocation2]  }
   0x4   :  { %s30_s19 = sshll.u32 %s1736_s18, 4  ;;  %s20_s21 = sshll.u32 %s1737_s20, 4  ;;  %s31_s19 = int_to_ptr.vmem [resolvable:$true] %s30_s19  ;;  %s21_s21 = int_to_ptr.vmem [resolvable:$true] %s20_s21 }
   0x5   :  { %s1620_s22 = scalar_lea.vmem %s31_s19, 64  ;;  %p1625_p1 = scmp.lt.s32.totalorder %s31_s19, %s31_s19 }
   0x6   :  { %p1621_p0 = scmp.ne.s32.totalorder %s31_s19, %s1620_s22  ;;  %p1626_p2 = scmp.lt.s32.totalorder %s1620_s22, %s1620_s22 }
   0x8   :  { %p1627_p3 = por %p1626_p2, %p1625_p1 }
   0xa   :  { %p1628_p4 = pnand %p1627_p3, %p1621_p0 }
   0xc   :  { %1631 = shalt.err (!%p1628_p4)
}
   0xd   :  { %33 = dma.hbm_to_vmem [thread:$0]  %s2320_s1, 64, %s31_s19, [#allocation6]  }
   0xe   :  { %s1640_s25 = scalar_lea.vmem %s21_s21, 64  ;;  %p1645_p6 = scmp.lt.s32.totalorder %s21_s21, %s21_s21 }
   0xf   :  { %p1641_p5 = scmp.ne.s32.totalorder %s21_s21, %s1640_s25  ;;  %p1646_p7 = scmp.lt.s32.totalorder %s1640_s25, %s1640_s25 }
  0x11   :  { %p1647_p8 = por %p1646_p7, %p1645_p6 }
  0x13   :  { %p1648_p9 = pnand %p1647_p8, %p1641_p5 }
  0x15   :  { %1651 = shalt.err (!%p1648_p9)
}
  0x16   :  { %23 = dma.hbm_to_vmem [thread:$0]  %s2319_s0, 64, %s21_s21, [#allocation3]  }
  0x17   :  { %s1738_s28 = smov [#allocation7]  }
  0x18   :  { %s39_s29 = sshll.u32 %s1738_s28, 4  ;;  %s40_s29 = int_to_ptr.vmem [resolvable:$true] %s39_s29 }
  0x19   :  { %s1660_s30 = scalar_lea.vmem %s40_s29, 1024  ;;  %p1665_p11 = scmp.lt.s32.totalorder %s40_s29, %s40_s29 }
  0x1a   :  { %p1661_p10 = scmp.ne.s32.totalorder %s40_s29, %s1660_s30  ;;  %p1666_p12 = scmp.lt.s32.totalorder %s1660_s30, %s1660_s30 }
  0x1c   :  { %p1667_p13 = por %p1666_p12, %p1665_p11 }
  0x1e   :  { %p1668_p0 = pnand %p1667_p13, %p1661_p10 }
  0x20   :  { %1671 = shalt.err (!%p1668_p0)
}
  0x21   :  { %s1739_s1 = smov 64   ;;  %s1740_s6 = smov 4  }
  0x22   :  { %45 = dma.hbm_to_vmem [thread:$0]  %s2321_s2, 1024, %s40_s29, [#allocation6], %s1739_s1, %s1739_s1, %s1740_s6  }
  0x23   :  { %s1741_s9 = smov [#allocation8]  }
  0x24   :  { %s51_s10 = sshll.u32 %s1741_s9, 4  ;;  %s52_s10 = int_to_ptr.vmem [resolvable:$true] %s51_s10 }
  0x25   :  { %s1680_s0 = scalar_lea.vmem %s52_s10, 1024  ;;  %p1685_p2 = scmp.lt.s32.totalorder %s52_s10, %s52_s10 }
  0x26   :  { %p1681_p1 = scmp.ne.s32.totalorder %s52_s10, %s1680_s0  ;;  %p1686_p3 = scmp.lt.s32.totalorder %s1680_s0, %s1680_s0 }
  0x28   :  { %p1687_p4 = por %p1686_p3, %p1685_p2 }
  0x2a   :  { %p1688_p5 = pnand %p1687_p4, %p1681_p1 }
  0x2c   :  { %1691 = shalt.err (!%p1688_p5)
}
  0x2d   :  { %57 = dma.hbm_to_vmem [thread:$0]  %s2322_s3, 1024, %s52_s10, [#allocation9], %s1739_s1, %s1739_s1, %s1740_s6  }
  0x2e   :  { %1720 = dma.done.wait [#allocation3], 64  }
  0x2f   :  { %1721 = vsyncadd [#allocation3], 4294967232 }
  0x30   :  { %1722 = dma.done.wait [#allocation6], 1088  }
  0x31   :  { %1723 = vsyncadd [#allocation6], 4294966208 }
  0x32   :  { %1724 = dma.done.wait [#allocation9], 1024  }
  0x33   :  { %1725 = vsyncadd [#allocation9], 4294966272  ;;  %v73_v0 = vld [vmem:[#allocation2] sm:$0xf]   ;;  %v1787_v1 = vld [vmem:[#allocation7] sm:$0xf] }
  0x34   :  { %2327 = vst [vmem:[#allocation15_spill] sm:$0xff] %v1787_v1  ;;  %v1789_v2 = vld [vmem:[#allocation7 + $0x4] sm:$0xf]  ;;  %v1791_v3 = vld [vmem:[#allocation7 + $0x8] sm:$0xf]  ;;  %s1858_s13 = smov 0  }
  0x35   :  { %2328 = vst [vmem:[#allocation16_spill] sm:$0xff] %v1789_v2  ;;  %2329 = vst [vmem:[#allocation17_spill] sm:$0xff] %v1791_v3  ;;  %v1793_v4 = vld [vmem:[#allocation7 + $0xc] sm:$0xf]  ;;  %v1795_v5 = vld [vmem:[#allocation7 + $0x10] sm:$0xf] }
  0x36   :  { %v1797_v6 = vld [vmem:[#allocation7 + $0x14] sm:$0xf]  ;;  %v1799_v7 = vld [vmem:[#allocation7 + $0x18] sm:$0xf]  ;;  %v1801_v8 = vld [vmem:[#allocation7 + $0x1c] sm:$0xf] }
  0x37   :  { %v1803_v9 = vld [vmem:[#allocation7 + $0x20] sm:$0xf]  ;;  %v1805_v10 = vld [vmem:[#allocation7 + $0x24] sm:$0xf]  ;;  %v1807_v11 = vld [vmem:[#allocation7 + $0x28] sm:$0xf] }
  0x38   :  { %v1809_v12 = vld [vmem:[#allocation7 + $0x2c] sm:$0xf]  ;;  %v1811_v13 = vld [vmem:[#allocation7 + $0x30] sm:$0xf]  ;;  %v1813_v14 = vld [vmem:[#allocation7 + $0x34] sm:$0xf] }
  0x39   :  { %v1815_v15 = vld [vmem:[#allocation7 + $0x38] sm:$0xf]  ;;  %v1817_v16 = vld [vmem:[#allocation7 + $0x3c] sm:$0xf]  ;;  %v1819_v17 = vld [vmem:[#allocation8] sm:$0xf] }
  0x3a   :  { %v1821_v18 = vld [vmem:[#allocation8 + $0x4] sm:$0xf]  ;;  %v1823_v19 = vld [vmem:[#allocation8 + $0x8] sm:$0xf]  ;;  %v1825_v20 = vld [vmem:[#allocation8 + $0xc] sm:$0xf] }
  0x3b   :  { %v1827_v21 = vld [vmem:[#allocation8 + $0x10] sm:$0xf]  ;;  %v1829_v22 = vld [vmem:[#allocation8 + $0x14] sm:$0xf]  ;;  %v1831_v23 = vld [vmem:[#allocation8 + $0x18] sm:$0xf] }
  0x3c   :  { %v1833_v24 = vld [vmem:[#allocation8 + $0x1c] sm:$0xf]  ;;  %v1835_v25 = vld [vmem:[#allocation8 + $0x20] sm:$0xf]  ;;  %v1837_v26 = vld [vmem:[#allocation8 + $0x24] sm:$0xf] }
  0x3d   :  { %v1839_v27 = vld [vmem:[#allocation8 + $0x28] sm:$0xf]  ;;  %v1841_v28 = vld [vmem:[#allocation8 + $0x2c] sm:$0xf]  ;;  %v1843_v29 = vld [vmem:[#allocation8 + $0x30] sm:$0xf] }
  0x3e   :  { %v1845_v30 = vld [vmem:[#allocation8 + $0x34] sm:$0xf]  ;;  %v1847_v31 = vld [vmem:[#allocation8 + $0x38] sm:$0xf]  ;;  %v1849_v32 = vld [vmem:[#allocation8 + $0x3c] sm:$0xf] }
  0x3f   :  { %v106_v33 = vld [vmem:[#allocation5] sm:$0xf]  ;;  %v1042_v34 = vld [vmem:[%s2323_s4] ss:$0 sm:$0xff] }
  0x40   :  { %v1854_v35 = vadd.f32 %v1042_v34, %v106_v33 }
  0x41 LB: > { %v1868_v36 = vcombine.low %v1815_v15, %v1817_v16  ;;  %v2325_v37 = vmov 0.0   ;;  %vm1743_vm0 = vmmov 0   ;;  %v1882_v38 = vcombine.low %v1811_v13, %v1813_v14  ;;  %v2330_v3 = vld [vmem:[#allocation17_spill] sm:$0xff]  ;;  %v2331_v2 = vld [vmem:[#allocation16_spill] sm:$0xff]  ;;  %v2332_v1 = vld [vmem:[#allocation15_spill] sm:$0xff]  ;;  %s1012_s13 = sadd.s32 2, %s1734_s13   ;;  %s1734_s13 = sphi %s1858_s13, %s1012_s13   ;;  %v1730_v0 = vphi %v73_v0, %v2334_v0  }
  0x42   : > { %1221 = vmatprep.subr.bf16.mxu0 %v2325_v37  ;;  %1241 = vmatprep.subr.bf16.mxu1 %v2325_v37  ;;  %v1890_v39 = vcombine.low %v1807_v11, %v1809_v12  ;;  %v1898_v40 = vcombine.low %v1803_v9, %v1805_v10  ;;  %v1906_v41 = vcombine.low %v1799_v7, %v1801_v8  ;;  %vm999_vm1 = vcmask 1043456   ;;  %p119_p6 = scmp.lt.s32.totalorder %s1012_s13, 30 }
  0x43   : > { %1222 = vmatpush3.bf16.xpose.msra.mxu0 %v1868_v36  ;;  %1242 = vmatpush3.bf16.xpose.msra.mxu1 %v1868_v36  ;;  %v1914_v42 = vcombine.low %v1795_v5, %v1797_v6  ;;  %v1922_v43 = vcombine.low %v2330_v3, %v1793_v4  ;;  %v125_v44 = vpack.c.bf16 %v1730_v0, %v1730_v0 }
  0x44   : > { %1223 = vmatprep.subr.bf16.mxu0 %v2325_v37  ;;  %1243 = vmatprep.subr.bf16.mxu1 %v2325_v37  ;;  %v1932_v46 = vcombine.low %v2332_v1, %v2331_v2  ;;  %v1941_v49 = vcombine.low %v1847_v31, %v1849_v32  ;;  %v1953_v50 = vcombine.low %v1843_v29, %v1845_v30 }
  0x45   : > { %1237 = vmatprep.mubr.msk.bf16.mxu0 %vm1743_vm0, %v2325_v37  ;;  %1257 = vmatprep.mubr.msk.bf16.mxu1 %vm1743_vm0, %v2325_v37  ;;  %v126_v45 = vunpack.c.l.bf16 %v125_v44  ;;  %v1961_v51 = vcombine.low %v1839_v27, %v1841_v28  ;;  %v1969_v52 = vcombine.low %v1835_v25, %v1837_v26  ;;  %v1977_v53 = vcombine.low %v1831_v23, %v1833_v24 }
  0x46   : > { %v1985_v54 = vcombine.low %v1827_v21, %v1829_v22  ;;  %v1993_v55 = vcombine.low %v1823_v19, %v1825_v20  ;;  %v2001_v56 = vcombine.low %v1819_v17, %v1821_v18 }
  0x47   : > { %v127_v47 = vsub.f32 %v1730_v0, %v126_v45 }
  0x49   : > { %v128_v48 = vpack.c.bf16 %v127_v47, %v127_v47 }
  0x4b   : > { %1224 = vmatpush3.bf16.xpose.msra.mxu0 %v1882_v38  ;;  %1244 = vmatpush3.bf16.xpose.msra.mxu1 %v1882_v38 }
  0x4c   : > { %1225 = vmatprep.subr.bf16.mxu0 %v2325_v37  ;;  %1245 = vmatprep.subr.bf16.mxu1 %v2325_v37 }
  0x53   : > { %1226 = vmatpush3.bf16.xpose.msra.mxu0 %v1890_v39  ;;  %1246 = vmatpush3.bf16.xpose.msra.mxu1 %v1890_v39 }
  0x54   : > { %1227 = vmatprep.subr.bf16.mxu0 %v2325_v37  ;;  %1247 = vmatprep.subr.bf16.mxu1 %v2325_v37 }
  0x5b   : > { %1228 = vmatpush3.bf16.xpose.msra.mxu0 %v1898_v40  ;;  %1248 = vmatpush3.bf16.xpose.msra.mxu1 %v1898_v40 }
  0x5c   : > { %1229 = vmatprep.subr.bf16.mxu0 %v2325_v37  ;;  %1249 = vmatprep.subr.bf16.mxu1 %v2325_v37 }
  0x63   : > { %1230 = vmatpush3.bf16.xpose.msra.mxu0 %v1906_v41  ;;  %1250 = vmatpush3.bf16.xpose.msra.mxu1 %v1906_v41 }
  0x64   : > { %1231 = vmatprep.subr.bf16.mxu0 %v2325_v37  ;;  %1251 = vmatprep.subr.bf16.mxu1 %v2325_v37 }
  0x6b   : > { %1232 = vmatpush3.bf16.xpose.msra.mxu0 %v1914_v42  ;;  %1252 = vmatpush3.bf16.xpose.msra.mxu1 %v1914_v42 }
  0x6c   : > { %1233 = vmatprep.subr.bf16.mxu0 %v2325_v37  ;;  %1253 = vmatprep.subr.bf16.mxu1 %v2325_v37 }
  0x73   : > { %1234 = vmatpush3.bf16.xpose.msra.mxu0 %v1922_v43  ;;  %1254 = vmatpush3.bf16.xpose.msra.mxu1 %v1922_v43 }
  0x74   : > { %1235 = vmatprep.subr.bf16.mxu0 %v2325_v37  ;;  %1255 = vmatprep.subr.bf16.mxu1 %v2325_v37 }
  0x7b   : > { %1236 = vmatpush3.bf16.xpose.msra.mxu0 %v1932_v46  ;;  %1256 = vmatpush3.bf16.xpose.msra.mxu1 %v1932_v46 }
  0x7c   : > { %1261 = vmatprep.subr.bf16.mxu0 %v2325_v37  ;;  %1281 = vmatprep.subr.bf16.mxu1 %v2325_v37 }
  0x82   : > { %1238 = vmatmul.mubr.bf16.vlgmr.msra.gmra.mxu0 %v128_v48  ;;  %1258 = vmatmul.mubr.bf16.vlgmr.msra.gmra.mxu1 %v125_v44 }
  0x83   : > { %1262 = vmatpush3.bf16.xpose.msra.mxu0 %v1941_v49  ;;  %1277 = vmatprep.mubr.msk.bf16.mxu0 %vm1743_vm0, %v2325_v37 }
  0x84   : > { %1263 = vmatprep.subr.bf16.mxu0 %v2325_v37  ;;  %1282 = vmatpush3.bf16.xpose.msra.mxu1 %v1868_v36 }
  0x85   : > { %1283 = vmatprep.subr.bf16.mxu1 %v2325_v37  ;;  %1297 = vmatprep.mubr.msk.bf16.mxu1 %vm1743_vm0, %v2325_v37 }
  0x8b   : > { %1264 = vmatpush3.bf16.xpose.msra.mxu0 %v1953_v50 }
  0x8c   : > { %1265 = vmatprep.subr.bf16.mxu0 %v2325_v37  ;;  %1284 = vmatpush3.bf16.xpose.msra.mxu1 %v1882_v38 }
  0x8d   : > { %1285 = vmatprep.subr.bf16.mxu1 %v2325_v37 }
  0x93   : > { %1266 = vmatpush3.bf16.xpose.msra.mxu0 %v1961_v51 }
  0x94   : > { %1267 = vmatprep.subr.bf16.mxu0 %v2325_v37  ;;  %1286 = vmatpush3.bf16.xpose.msra.mxu1 %v1890_v39 }
  0x95   : > { %1287 = vmatprep.subr.bf16.mxu1 %v2325_v37 }
  0x9b   : > { %1268 = vmatpush3.bf16.xpose.msra.mxu0 %v1969_v52 }
  0x9c   : > { %1269 = vmatprep.subr.bf16.mxu0 %v2325_v37  ;;  %1288 = vmatpush3.bf16.xpose.msra.mxu1 %v1898_v40 }
  0x9d   : > { %1289 = vmatprep.subr.bf16.mxu1 %v2325_v37 }
  0xa3   : > { %1270 = vmatpush3.bf16.xpose.msra.mxu0 %v1977_v53 }
  0xa4   : > { %1271 = vmatprep.subr.bf16.mxu0 %v2325_v37  ;;  %1290 = vmatpush3.bf16.xpose.msra.mxu1 %v1906_v41 }
  0xa5   : > { %1291 = vmatprep.subr.bf16.mxu1 %v2325_v37 }
  0xab   : > { %1272 = vmatpush3.bf16.xpose.msra.mxu0 %v1985_v54 }
  0xac   : > { %1273 = vmatprep.subr.bf16.mxu0 %v2325_v37  ;;  %1292 = vmatpush3.bf16.xpose.msra.mxu1 %v1914_v42 }
  0xad   : > { %1293 = vmatprep.subr.bf16.mxu1 %v2325_v37 }
  0xb3   : > { %1274 = vmatpush3.bf16.xpose.msra.mxu0 %v1993_v55 }
  0xb4   : > { %1275 = vmatprep.subr.bf16.mxu0 %v2325_v37  ;;  %1294 = vmatpush3.bf16.xpose.msra.mxu1 %v1922_v43 }
  0xb5   : > { %1295 = vmatprep.subr.bf16.mxu1 %v2325_v37 }
  0xbb   : > { %1276 = vmatpush3.bf16.xpose.msra.mxu0 %v2001_v56 }
  0xbc   : > { %1296 = vmatpush3.bf16.xpose.msra.mxu1 %v1932_v46  ;;  %1301 = vmatprep.subr.bf16.mxu0 %v2325_v37 }
  0xbd   : > { %1321 = vmatprep.subr.bf16.mxu1 %v2325_v37 }
  0xc2   : > { %1278 = vmatmul.mubr.bf16.vlgmr.msra.gmra.mxu0 %v125_v44 }
  0xc3   : > { %1302 = vmatpush3.bf16.xpose.msra.mxu0 %v1868_v36  ;;  %1317 = vmatprep.mubr.msk.bf16.mxu0 %vm1743_vm0, %v2325_v37 }
  0xc4   : > { %1303 = vmatprep.subr.bf16.mxu0 %v2325_v37 }
  0xcb   : > { %1304 = vmatpush3.bf16.xpose.msra.mxu0 %v1882_v38 }
  0xcc   : > { %1305 = vmatprep.subr.bf16.mxu0 %v2325_v37 }
  0xd3   : > { %1306 = vmatpush3.bf16.xpose.msra.mxu0 %v1890_v39 }
  0xd4   : > { %1307 = vmatprep.subr.bf16.mxu0 %v2325_v37 }
  0xdb   : > { %1308 = vmatpush3.bf16.xpose.msra.mxu0 %v1898_v40 }
  0xdc   : > { %1309 = vmatprep.subr.bf16.mxu0 %v2325_v37 }
  0xe3   : > { %1310 = vmatpush3.bf16.xpose.msra.mxu0 %v1906_v41 }
  0xe4   : > { %1311 = vmatprep.subr.bf16.mxu0 %v2325_v37 }
  0xeb   : > { %1312 = vmatpush3.bf16.xpose.msra.mxu0 %v1914_v42 }
  0xec   : > { %1313 = vmatprep.subr.bf16.mxu0 %v2325_v37 }
  0xf3   : > { %1314 = vmatpush3.bf16.xpose.msra.mxu0 %v1922_v43 }
  0xf4   : > { %1315 = vmatprep.subr.bf16.mxu0 %v2325_v37 }
  0xfb   : > { %1316 = vmatpush3.bf16.xpose.msra.mxu0 %v1932_v46 }
  0xfc   : > { %1341 = vmatprep.subr.bf16.mxu0 %v2325_v37 }
 0x142   : > { %v211_v57 = vpop.f32.mrf.mxu0  ;;  %v251_v58 = vpop.f32.mrf.mxu1 }
 0x143   : > { %v252_v34 = vadd.f32 %v251_v58, %v211_v57 }
 0x144   : > { %v1239_v59 = vpop.f32.mrf.mxu0  ;;  %v1259_v60 = vpop.f32.mrf.mxu1 }
 0x145   : > { %v2333_v60 = vmov 0.0  }
 0x146   : > { %v214_v61 = vpop.f32.mrf.mxu0  ;;  %v254_v62 = vpop.f32.mrf.mxu1 }
 0x148   : > { %v1240_v63 = vpop.f32.mrf.mxu0  ;;  %v1260_v33 = vpop.f32.mrf.mxu1 }
 0x182   : > { %v339_v44 = vpop.f32.mrf.mxu0 }
 0x183   : > { %v345_v45 = vadd.f32 %v339_v44, %v252_v34 }
 0x184   : > { %v1279_v47 = vpop.f32.mrf.mxu0 }
 0x185   : > { %v346_v48 = vadd.f32 %v345_v45, %v1854_v35 }
 0x186   : > { %v342_v1 = vpop.f32.mrf.mxu0 }
 0x187   : > { %1608 = vtanh.f32 %v346_v48 }
 0x188   : > { %v1280_v2 = vpop.f32.mrf.mxu0 }
 0x194   : > { %v1609_v3 = vpop.eup %1608 }
 0x195   : > { %v2027_v37 = vsub.f32 %v1609_v3, %v1730_v0  ;;  %v349_v1 = vmul.f32 %v1609_v3, %v1609_v3 }
 0x197   : > { %v351_v59 = vpack.c.bf16 %v2027_v37, %v2027_v37  ;;  %v2049_v2 = vsub.f32 1.0, %v349_v1 }
 0x199   : > { %1298 = vmatmul.mubr.bf16.vlgmr.msra.gmra.mxu1 %v351_v59 }
 0x19a   : > { %1322 = vmatpush3.bf16.xpose.msra.mxu1 %v1868_v36  ;;  %1337 = vmatprep.mubr.msk.bf16.mxu1 %vm1743_vm0, %v2333_v60 }
 0x19b   : > { %1323 = vmatprep.subr.bf16.mxu1 %v2333_v60 }
 0x1a2   : > { %1324 = vmatpush3.bf16.xpose.msra.mxu1 %v1882_v38 }
 0x1a3   : > { %1325 = vmatprep.subr.bf16.mxu1 %v2333_v60 }
 0x1aa   : > { %1326 = vmatpush3.bf16.xpose.msra.mxu1 %v1890_v39 }
 0x1ab   : > { %1327 = vmatprep.subr.bf16.mxu1 %v2333_v60 }
 0x1b2   : > { %1328 = vmatpush3.bf16.xpose.msra.mxu1 %v1898_v40 }
 0x1b3   : > { %1329 = vmatprep.subr.bf16.mxu1 %v2333_v60 }
 0x1ba   : > { %1330 = vmatpush3.bf16.xpose.msra.mxu1 %v1906_v41 }
 0x1bb   : > { %1331 = vmatprep.subr.bf16.mxu1 %v2333_v60 }
 0x1c2   : > { %1332 = vmatpush3.bf16.xpose.msra.mxu1 %v1914_v42 }
 0x1c3   : > { %1333 = vmatprep.subr.bf16.mxu1 %v2333_v60 }
 0x1ca   : > { %1334 = vmatpush3.bf16.xpose.msra.mxu1 %v1922_v43 }
 0x1cb   : > { %1335 = vmatprep.subr.bf16.mxu1 %v2333_v60 }
 0x1d2   : > { %1336 = vmatpush3.bf16.xpose.msra.mxu1 %v1932_v46 }
 0x1d3   : > { %1361 = vmatprep.subr.bf16.mxu1 %v2333_v60 }
 0x259   : > { %v386_v57 = vpop.f32.mrf.mxu1 }
 0x25a   : > { %v392_v58 = vmul.f32 %v386_v57, %v2049_v2 }
 0x25b   : > { %v1299_v61 = vpop.f32.mrf.mxu1 }
 0x25c   : > { %v393_v62 = vadd.f32 %v392_v58, %v2027_v37 }
 0x25d   : > { %v389_v63 = vpop.f32.mrf.mxu1 }
 0x25e   : > { %v394_v33 = vpack.c.bf16 %v393_v62, %v393_v62 }
 0x25f   : > { %v1300_v34 = vpop.f32.mrf.mxu1 }
 0x260   : > { %1318 = vmatmul.mubr.bf16.vlgmr.msra.gmra.mxu0 %v394_v33 }
 0x261   : > { %1342 = vmatpush3.bf16.xpose.msra.mxu0 %v1868_v36  ;;  %1357 = vmatprep.mubr.msk.bf16.mxu0 %vm1743_vm0, %v2333_v60 }
 0x262   : > { %1343 = vmatprep.subr.bf16.mxu0 %v2333_v60 }
 0x269   : > { %1344 = vmatpush3.bf16.xpose.msra.mxu0 %v1882_v38 }
 0x26a   : > { %1345 = vmatprep.subr.bf16.mxu0 %v2333_v60 }
 0x271   : > { %1346 = vmatpush3.bf16.xpose.msra.mxu0 %v1890_v39 }
 0x272   : > { %1347 = vmatprep.subr.bf16.mxu0 %v2333_v60 }
 0x279   : > { %1348 = vmatpush3.bf16.xpose.msra.mxu0 %v1898_v40 }
 0x27a   : > { %1349 = vmatprep.subr.bf16.mxu0 %v2333_v60 }
 0x281   : > { %1350 = vmatpush3.bf16.xpose.msra.mxu0 %v1906_v41 }
 0x282   : > { %1351 = vmatprep.subr.bf16.mxu0 %v2333_v60 }
 0x289   : > { %1352 = vmatpush3.bf16.xpose.msra.mxu0 %v1914_v42 }
 0x28a   : > { %1353 = vmatprep.subr.bf16.mxu0 %v2333_v60 }
 0x291   : > { %1354 = vmatpush3.bf16.xpose.msra.mxu0 %v1922_v43 }
 0x292   : > { %1355 = vmatprep.subr.bf16.mxu0 %v2333_v60 }
 0x299   : > { %1356 = vmatpush3.bf16.xpose.msra.mxu0 %v1932_v46 }
 0x29a   : > { %1381 = vmatprep.subr.bf16.mxu0 %v2333_v60 }
 0x320   : > { %v429_v3 = vpop.f32.mrf.mxu0 }
 0x321   : > { %v435_v44 = vmul.f32 %v429_v3, %v2049_v2 }
 0x322   : > { %v1319_v45 = vpop.f32.mrf.mxu0 }
 0x323   : > { %v436_v47 = vadd.f32 %v435_v44, %v2027_v37 }
 0x324   : > { %v432_v48 = vpop.f32.mrf.mxu0 }
 0x325   : > { %v437_v59 = vpack.c.bf16 %v436_v47, %v436_v47 }
 0x326   : > { %v1320_v1 = vpop.f32.mrf.mxu0 }
 0x327   : > { %1338 = vmatmul.mubr.bf16.vlgmr.msra.gmra.mxu1 %v437_v59 }
 0x328   : > { %1362 = vmatpush3.bf16.xpose.msra.mxu1 %v1868_v36  ;;  %1377 = vmatprep.mubr.msk.bf16.mxu1 %vm1743_vm0, %v2333_v60 }
 0x329   : > { %1363 = vmatprep.subr.bf16.mxu1 %v2333_v60 }
 0x330   : > { %1364 = vmatpush3.bf16.xpose.msra.mxu1 %v1882_v38 }
 0x331   : > { %1365 = vmatprep.subr.bf16.mxu1 %v2333_v60 }
 0x338   : > { %1366 = vmatpush3.bf16.xpose.msra.mxu1 %v1890_v39 }
 0x339   : > { %1367 = vmatprep.subr.bf16.mxu1 %v2333_v60 }
 0x340   : > { %1368 = vmatpush3.bf16.xpose.msra.mxu1 %v1898_v40 }
 0x341   : > { %1369 = vmatprep.subr.bf16.mxu1 %v2333_v60 }
 0x348   : > { %1370 = vmatpush3.bf16.xpose.msra.mxu1 %v1906_v41 }
 0x349   : > { %1371 = vmatprep.subr.bf16.mxu1 %v2333_v60 }
 0x350   : > { %1372 = vmatpush3.bf16.xpose.msra.mxu1 %v1914_v42 }
 0x351   : > { %1373 = vmatprep.subr.bf16.mxu1 %v2333_v60 }
 0x358   : > { %1374 = vmatpush3.bf16.xpose.msra.mxu1 %v1922_v43 }
 0x359   : > { %1375 = vmatprep.subr.bf16.mxu1 %v2333_v60 }
 0x360   : > { %1376 = vmatpush3.bf16.xpose.msra.mxu1 %v1932_v46 }
 0x361   : > { %1401 = vmatprep.subr.bf16.mxu1 %v2333_v60 }
 0x3e7   : > { %v472_v57 = vpop.f32.mrf.mxu1 }
 0x3e8   : > { %v478_v58 = vmul.f32 %v472_v57, %v2049_v2 }
 0x3e9   : > { %v1339_v61 = vpop.f32.mrf.mxu1 }
 0x3ea   : > { %v479_v62 = vadd.f32 %v478_v58, %v2027_v37 }
 0x3eb   : > { %v475_v63 = vpop.f32.mrf.mxu1 }
 0x3ec   : > { %v480_v33 = vpack.c.bf16 %v479_v62, %v479_v62 }
 0x3ed   : > { %v1340_v34 = vpop.f32.mrf.mxu1 }
 0x3ee   : > { %1358 = vmatmul.mubr.bf16.vlgmr.msra.gmra.mxu0 %v480_v33 }
 0x3ef   : > { %1382 = vmatpush3.bf16.xpose.msra.mxu0 %v1868_v36  ;;  %1397 = vmatprep.mubr.msk.bf16.mxu0 %vm1743_vm0, %v2333_v60 }
 0x3f0   : > { %1383 = vmatprep.subr.bf16.mxu0 %v2333_v60 }
 0x3f7   : > { %1384 = vmatpush3.bf16.xpose.msra.mxu0 %v1882_v38 }
 0x3f8   : > { %1385 = vmatprep.subr.bf16.mxu0 %v2333_v60 }
 0x3ff   : > { %1386 = vmatpush3.bf16.xpose.msra.mxu0 %v1890_v39 }
 0x400   : > { %1387 = vmatprep.subr.bf16.mxu0 %v2333_v60 }
 0x407   : > { %1388 = vmatpush3.bf16.xpose.msra.mxu0 %v1898_v40 }
 0x408   : > { %1389 = vmatprep.subr.bf16.mxu0 %v2333_v60 }
 0x40f   : > { %1390 = vmatpush3.bf16.xpose.msra.mxu0 %v1906_v41 }
 0x410   : > { %1391 = vmatprep.subr.bf16.mxu0 %v2333_v60 }
 0x417   : > { %1392 = vmatpush3.bf16.xpose.msra.mxu0 %v1914_v42 }
 0x418   : > { %1393 = vmatprep.subr.bf16.mxu0 %v2333_v60 }
 0x41f   : > { %1394 = vmatpush3.bf16.xpose.msra.mxu0 %v1922_v43 }
 0x420   : > { %1395 = vmatprep.subr.bf16.mxu0 %v2333_v60 }
 0x427   : > { %1396 = vmatpush3.bf16.xpose.msra.mxu0 %v1932_v46 }
 0x428   : > { %1421 = vmatprep.subr.bf16.mxu0 %v2333_v60 }
 0x4ae   : > { %v515_v3 = vpop.f32.mrf.mxu0 }
 0x4af   : > { %v521_v44 = vmul.f32 %v515_v3, %v2049_v2 }
 0x4b0   : > { %v1359_v45 = vpop.f32.mrf.mxu0 }
 0x4b1   : > { %v522_v47 = vadd.f32 %v521_v44, %v2027_v37 }
 0x4b2   : > { %v518_v48 = vpop.f32.mrf.mxu0 }
 0x4b3   : > { %v523_v59 = vpack.c.bf16 %v522_v47, %v522_v47 }
 0x4b4   : > { %v1360_v1 = vpop.f32.mrf.mxu0 }
 0x4b5   : > { %1378 = vmatmul.mubr.bf16.vlgmr.msra.gmra.mxu1 %v523_v59 }
 0x4b6   : > { %1402 = vmatpush3.bf16.xpose.msra.mxu1 %v1868_v36  ;;  %1417 = vmatprep.mubr.msk.bf16.mxu1 %vm1743_vm0, %v2333_v60 }
 0x4b7   : > { %1403 = vmatprep.subr.bf16.mxu1 %v2333_v60 }
 0x4be   : > { %1404 = vmatpush3.bf16.xpose.msra.mxu1 %v1882_v38 }
 0x4bf   : > { %1405 = vmatprep.subr.bf16.mxu1 %v2333_v60 }
 0x4c6   : > { %1406 = vmatpush3.bf16.xpose.msra.mxu1 %v1890_v39 }
 0x4c7   : > { %1407 = vmatprep.subr.bf16.mxu1 %v2333_v60 }
 0x4ce   : > { %1408 = vmatpush3.bf16.xpose.msra.mxu1 %v1898_v40 }
 0x4cf   : > { %1409 = vmatprep.subr.bf16.mxu1 %v2333_v60 }
 0x4d6   : > { %1410 = vmatpush3.bf16.xpose.msra.mxu1 %v1906_v41 }
 0x4d7   : > { %1411 = vmatprep.subr.bf16.mxu1 %v2333_v60 }
 0x4de   : > { %1412 = vmatpush3.bf16.xpose.msra.mxu1 %v1914_v42 }
 0x4df   : > { %1413 = vmatprep.subr.bf16.mxu1 %v2333_v60 }
 0x4e6   : > { %1414 = vmatpush3.bf16.xpose.msra.mxu1 %v1922_v43 }
 0x4e7   : > { %1415 = vmatprep.subr.bf16.mxu1 %v2333_v60 }
 0x4ee   : > { %1416 = vmatpush3.bf16.xpose.msra.mxu1 %v1932_v46 }
 0x4ef   : > { %1441 = vmatprep.subr.bf16.mxu1 %v2333_v60 }
 0x575   : > { %v558_v57 = vpop.f32.mrf.mxu1 }
 0x576   : > { %v564_v58 = vmul.f32 %v558_v57, %v2049_v2 }
 0x577   : > { %v1379_v61 = vpop.f32.mrf.mxu1 }
 0x578   : > { %v565_v62 = vadd.f32 %v564_v58, %v2027_v37 }
 0x579   : > { %v561_v63 = vpop.f32.mrf.mxu1 }
 0x57a   : > { %v566_v33 = vpack.c.bf16 %v565_v62, %v565_v62 }
 0x57b   : > { %v1380_v34 = vpop.f32.mrf.mxu1 }
 0x57c   : > { %1398 = vmatmul.mubr.bf16.vlgmr.msra.gmra.mxu0 %v566_v33 }
 0x57d   : > { %1422 = vmatpush3.bf16.xpose.msra.mxu0 %v1868_v36  ;;  %1437 = vmatprep.mubr.msk.bf16.mxu0 %vm1743_vm0, %v2333_v60 }
 0x57e   : > { %1423 = vmatprep.subr.bf16.mxu0 %v2333_v60 }
 0x585   : > { %1424 = vmatpush3.bf16.xpose.msra.mxu0 %v1882_v38 }
 0x586   : > { %1425 = vmatprep.subr.bf16.mxu0 %v2333_v60 }
 0x58d   : > { %1426 = vmatpush3.bf16.xpose.msra.mxu0 %v1890_v39 }
 0x58e   : > { %1427 = vmatprep.subr.bf16.mxu0 %v2333_v60 }
 0x595   : > { %1428 = vmatpush3.bf16.xpose.msra.mxu0 %v1898_v40 }
 0x596   : > { %1429 = vmatprep.subr.bf16.mxu0 %v2333_v60 }
 0x59d   : > { %1430 = vmatpush3.bf16.xpose.msra.mxu0 %v1906_v41 }
 0x59e   : > { %1431 = vmatprep.subr.bf16.mxu0 %v2333_v60 }
 0x5a5   : > { %1432 = vmatpush3.bf16.xpose.msra.mxu0 %v1914_v42 }
 0x5a6   : > { %1433 = vmatprep.subr.bf16.mxu0 %v2333_v60 }
 0x5ad   : > { %1434 = vmatpush3.bf16.xpose.msra.mxu0 %v1922_v43 }
 0x5ae   : > { %1435 = vmatprep.subr.bf16.mxu0 %v2333_v60 }
 0x5b5   : > { %1436 = vmatpush3.bf16.xpose.msra.mxu0 %v1932_v46 }
 0x5b6   : > { %1461 = vmatprep.subr.bf16.mxu0 %v2333_v60 }
 0x63c   : > { %v601_v3 = vpop.f32.mrf.mxu0 }
 0x63d   : > { %v607_v44 = vmul.f32 %v601_v3, %v2049_v2 }
 0x63e   : > { %v1399_v45 = vpop.f32.mrf.mxu0 }
 0x63f   : > { %v608_v47 = vadd.f32 %v607_v44, %v2027_v37 }
 0x640   : > { %v604_v48 = vpop.f32.mrf.mxu0 }
 0x641   : > { %v2154_v59 = vadd.f32 %v1730_v0, %v608_v47 }
 0x642   : > { %v1400_v1 = vpop.f32.mrf.mxu0 }
 0x643   : > { %v610_v57 = vpack.c.bf16 %v2154_v59, %v2154_v59 }
 0x645   : > { %1438 = vmatmul.mubr.bf16.vlgmr.msra.gmra.mxu0 %v610_v57  ;;  %v611_v58 = vunpack.c.l.bf16 %v610_v57 }
 0x646   : > { %1462 = vmatpush3.bf16.xpose.msra.mxu0 %v1868_v36  ;;  %1477 = vmatprep.mubr.msk.bf16.mxu0 %vm1743_vm0, %v2333_v60 }
 0x647   : > { %v612_v2 = vsub.f32 %v2154_v59, %v611_v58  ;;  %1463 = vmatprep.subr.bf16.mxu0 %v2333_v60 }
 0x649   : > { %v613_v37 = vpack.c.bf16 %v612_v2, %v612_v2 }
 0x64b   : > { %1418 = vmatmul.mubr.bf16.vlgmr.msra.gmra.mxu1 %v613_v37 }
 0x64c   : > { %1442 = vmatpush3.bf16.xpose.msra.mxu1 %v1941_v49  ;;  %1457 = vmatprep.mubr.msk.bf16.mxu1 %vm1743_vm0, %v2333_v60 }
 0x64d   : > { %1443 = vmatprep.subr.bf16.mxu1 %v2333_v60 }
 0x64e   : > { %1464 = vmatpush3.bf16.xpose.msra.mxu0 %v1882_v38 }
 0x64f   : > { %1465 = vmatprep.subr.bf16.mxu0 %v2333_v60 }
 0x654   : > { %1444 = vmatpush3.bf16.xpose.msra.mxu1 %v1953_v50 }
 0x655   : > { %1445 = vmatprep.subr.bf16.mxu1 %v2333_v60 }
 0x656   : > { %1466 = vmatpush3.bf16.xpose.msra.mxu0 %v1890_v39 }
 0x657   : > { %1467 = vmatprep.subr.bf16.mxu0 %v2333_v60 }
 0x65c   : > { %1446 = vmatpush3.bf16.xpose.msra.mxu1 %v1961_v51 }
 0x65d   : > { %1447 = vmatprep.subr.bf16.mxu1 %v2333_v60 }
 0x65e   : > { %1468 = vmatpush3.bf16.xpose.msra.mxu0 %v1898_v40 }
 0x65f   : > { %1469 = vmatprep.subr.bf16.mxu0 %v2333_v60 }
 0x664   : > { %1448 = vmatpush3.bf16.xpose.msra.mxu1 %v1969_v52 }
 0x665   : > { %1449 = vmatprep.subr.bf16.mxu1 %v2333_v60 }
 0x666   : > { %1470 = vmatpush3.bf16.xpose.msra.mxu0 %v1906_v41 }
 0x667   : > { %1471 = vmatprep.subr.bf16.mxu0 %v2333_v60 }
 0x66c   : > { %1450 = vmatpush3.bf16.xpose.msra.mxu1 %v1977_v53 }
 0x66d   : > { %1451 = vmatprep.subr.bf16.mxu1 %v2333_v60 }
 0x66e   : > { %1472 = vmatpush3.bf16.xpose.msra.mxu0 %v1914_v42 }
 0x66f   : > { %1473 = vmatprep.subr.bf16.mxu0 %v2333_v60 }
 0x674   : > { %1452 = vmatpush3.bf16.xpose.msra.mxu1 %v1985_v54 }
 0x675   : > { %1453 = vmatprep.subr.bf16.mxu1 %v2333_v60 }
 0x676   : > { %1474 = vmatpush3.bf16.xpose.msra.mxu0 %v1922_v43 }
 0x677   : > { %1475 = vmatprep.subr.bf16.mxu0 %v2333_v60 }
 0x67c   : > { %1454 = vmatpush3.bf16.xpose.msra.mxu1 %v1993_v55 }
 0x67d   : > { %1455 = vmatprep.subr.bf16.mxu1 %v2333_v60 }
 0x67e   : > { %1476 = vmatpush3.bf16.xpose.msra.mxu0 %v1932_v46 }
 0x67f   : > { %1501 = vmatprep.subr.bf16.mxu0 %v2333_v60 }
 0x684   : > { %1456 = vmatpush3.bf16.xpose.msra.mxu1 %v2001_v56 }
 0x685   : > { %1481 = vmatprep.subr.bf16.mxu1 %v2333_v60 }
 0x68b   : > { %1458 = vmatmul.mubr.bf16.vlgmr.msra.gmra.mxu1 %v610_v57 }
 0x68c   : > { %1482 = vmatpush3.bf16.xpose.msra.mxu1 %v1868_v36  ;;  %1497 = vmatprep.mubr.msk.bf16.mxu1 %vm1743_vm0, %v2333_v60 }
 0x68d   : > { %1483 = vmatprep.subr.bf16.mxu1 %v2333_v60 }
 0x694   : > { %1484 = vmatpush3.bf16.xpose.msra.mxu1 %v1882_v38 }
 0x695   : > { %1485 = vmatprep.subr.bf16.mxu1 %v2333_v60 }
 0x69c   : > { %1486 = vmatpush3.bf16.xpose.msra.mxu1 %v1890_v39 }
 0x69d   : > { %1487 = vmatprep.subr.bf16.mxu1 %v2333_v60 }
 0x6a4   : > { %1488 = vmatpush3.bf16.xpose.msra.mxu1 %v1898_v40 }
 0x6a5   : > { %1489 = vmatprep.subr.bf16.mxu1 %v2333_v60 }
 0x6ac   : > { %1490 = vmatpush3.bf16.xpose.msra.mxu1 %v1906_v41 }
 0x6ad   : > { %1491 = vmatprep.subr.bf16.mxu1 %v2333_v60 }
 0x6b4   : > { %1492 = vmatpush3.bf16.xpose.msra.mxu1 %v1914_v42 }
 0x6b5   : > { %1493 = vmatprep.subr.bf16.mxu1 %v2333_v60 }
 0x6bc   : > { %1494 = vmatpush3.bf16.xpose.msra.mxu1 %v1922_v43 }
 0x6bd   : > { %1495 = vmatprep.subr.bf16.mxu1 %v2333_v60 }
 0x6c4   : > { %1496 = vmatpush3.bf16.xpose.msra.mxu1 %v1932_v46 }
 0x6c5   : > { %1521 = vmatprep.subr.bf16.mxu1 %v2333_v60 }
 0x705   : > { %v688_v0 = vpop.f32.mrf.mxu0 }
 0x707   : > { %v1439_v49 = vpop.f32.mrf.mxu0 }
 0x709   : > { %v691_v50 = vpop.f32.mrf.mxu0 }
 0x70b   : > { %v648_v51 = vpop.f32.mrf.mxu1  ;;  %v1440_v52 = vpop.f32.mrf.mxu0 }
 0x70c   : > { %v689_v56 = vadd.f32 %v688_v0, %v648_v51 }
 0x70d   : > { %v1419_v53 = vpop.f32.mrf.mxu1 }
 0x70f   : > { %v651_v54 = vpop.f32.mrf.mxu1 }
 0x711   : > { %v1420_v55 = vpop.f32.mrf.mxu1 }
 0x74b   : > { %v728_v61 = vpop.f32.mrf.mxu1 }
 0x74c   : > { %v734_v62 = vadd.f32 %v728_v61, %v689_v56 }
 0x74d   : > { %v1459_v63 = vpop.f32.mrf.mxu1 }
 0x74e   : > { %v735_v33 = vadd.f32 %v734_v62, %v1854_v35 }
 0x74f   : > { %v731_v34 = vpop.f32.mrf.mxu1 }
 0x750   : > { %1610 = vtanh.f32 %v735_v33 }
 0x751   : > { %v1460_v3 = vpop.f32.mrf.mxu1 }
 0x75d   : > { %v1611_v44 = vpop.eup %1610 }
 0x75e   : > { %v2215_v45 = vsub.f32 %v1611_v44, %v2154_v59  ;;  %v738_v52 = vmul.f32 %v1611_v44, %v1611_v44 }
 0x760   : > { %v740_v47 = vpack.c.bf16 %v2215_v45, %v2215_v45  ;;  %v998_v48 = vmul.f32 %v2215_v45, %v2215_v45  ;;  %v2241_v53 = vsub.f32 1.0, %v738_v52 }
 0x762   : > { %1478 = vmatmul.mubr.bf16.vlgmr.msra.gmra.mxu0 %v740_v47  ;;  %v1000_v1 = vsel %vm999_vm1, %v998_v48, 0.0 }
 0x763   : > { %1001 = vadd.xlane.f32.xlu0 %v1000_v1  ;;  %1502 = vmatpush3.bf16.xpose.msra.mxu0 %v1868_v36 }
 0x764   : > { %1503 = vmatprep.subr.bf16.mxu0 %v2333_v60  ;;  %1517 = vmatprep.mubr.msk.bf16.mxu0 %vm1743_vm0, %v2333_v60 }
 0x76b   : > { %1504 = vmatpush3.bf16.xpose.msra.mxu0 %v1882_v38 }
 0x76c   : > { %1505 = vmatprep.subr.bf16.mxu0 %v2333_v60 }
 0x773   : > { %1506 = vmatpush3.bf16.xpose.msra.mxu0 %v1890_v39 }
 0x774   : > { %1507 = vmatprep.subr.bf16.mxu0 %v2333_v60 }
 0x77b   : > { %1508 = vmatpush3.bf16.xpose.msra.mxu0 %v1898_v40 }
 0x77c   : > { %1509 = vmatprep.subr.bf16.mxu0 %v2333_v60 }
 0x783   : > { %1510 = vmatpush3.bf16.xpose.msra.mxu0 %v1906_v41 }
 0x784   : > { %1511 = vmatprep.subr.bf16.mxu0 %v2333_v60 }
 0x78b   : > { %1512 = vmatpush3.bf16.xpose.msra.mxu0 %v1914_v42 }
 0x78c   : > { %1513 = vmatprep.subr.bf16.mxu0 %v2333_v60 }
 0x793   : > { %1514 = vmatpush3.bf16.xpose.msra.mxu0 %v1922_v43 }
 0x794   : > { %1515 = vmatprep.subr.bf16.mxu0 %v2333_v60 }
 0x79b   : > { %1516 = vmatpush3.bf16.xpose.msra.mxu0 %v1932_v46 }
 0x79c   : > { %1541 = vmatprep.subr.bf16.mxu0 %v2333_v60 }
 0x7ec   : > { %v1002_v57 = vpop.xlane.xlu0 %1001 }
 0x7ed   : > { %v1003_v58 = vsel %vm999_vm1, %v1002_v57, -inf }
 0x7ee   : > { %v1004_v2 = vrot.slane %v1003_v58, 4 }
 0x7f0   : > { %v1005_v37 = vmax.f32 %v1003_v58, %v1004_v2 }
 0x7f2   : > { %v1006_v0 = vrot.slane %v1005_v37, 2 }
 0x7f4   : > { %v1007_v49 = vmax.f32 %v1005_v37, %v1006_v0 }
 0x7f6   : > { %v1008_v50 = vrot.slane %v1007_v49, 1 }
 0x7f8   : > { %v1009_v51 = vmax.f32 %v1007_v49, %v1008_v50 }
 0x7fa   : > { %1581 = vpush %v1009_v51 }
 0x822   : > { %v775_v54 = vpop.f32.mrf.mxu0 }
 0x823   : > { %v781_v55 = vmul.f32 %v775_v54, %v2241_v53 }
 0x824   : > { %v1479_v56 = vpop.f32.mrf.mxu0 }
 0x825   : > { %v782_v61 = vadd.f32 %v781_v55, %v2215_v45 }
 0x826   : > { %v778_v62 = vpop.f32.mrf.mxu0 }
 0x827   : > { %v783_v63 = vpack.c.bf16 %v782_v61, %v782_v61 }
 0x828   : > { %v1480_v33 = vpop.f32.mrf.mxu0 }
 0x829   : > { %1498 = vmatmul.mubr.bf16.vlgmr.msra.gmra.mxu1 %v783_v63 }
 0x82a   : > { %1522 = vmatpush3.bf16.xpose.msra.mxu1 %v1868_v36  ;;  %1537 = vmatprep.mubr.msk.bf16.mxu1 %vm1743_vm0, %v2333_v60 }
 0x82b   : > { %s2248_s4 = spop %1581  ;;  %1523 = vmatprep.subr.bf16.mxu1 %v2333_v60 }
 0x82c   : > { %p120_p7 = scmp.ge.f32.partialorder %s2248_s4, 9.999999e-09 }
 0x82e   : > { %p121_p8 = pnand %p120_p7, %p119_p6 }
 0x82f   :  { %s1744_s14 = smov (%p121_p8), [#allocation10]  }
 0x830   :  { %s1020_s15 = sshll.u32 (%p121_p8), %s1744_s14, 4  ;;  %s1021_s15 = int_to_ptr.vmem [resolvable:$true] %s1020_s15 }
 0x831   :  { %s1692_s16 = scalar_lea.vmem (%p121_p8), %s1021_s15, 64  ;;  %p1697_p10 = scmp.lt.s32.totalorder (%p121_p8), %s1021_s15, %s1021_s15 }
 0x832   : > { %1524 = vmatpush3.bf16.xpose.msra.mxu1 %v1882_v38  ;;  %p1693_p9 = scmp.ne.s32.totalorder (%p121_p8), %s1021_s15, %s1692_s16  ;;  %p1698_p11 = scmp.lt.s32.totalorder (%p121_p8), %s1692_s16, %s1692_s16 }
 0x833   : > { %1525 = vmatprep.subr.bf16.mxu1 %v2333_v60 }
 0x834   :  { %p1699_p12 = por (%p121_p8), %p1698_p11, %p1697_p10 }
 0x836   :  { %p1700_p13 = pnand (%p121_p8), %p1699_p12, %p1693_p9 }
 0x83a   : > { %1526 = vmatpush3.bf16.xpose.msra.mxu1 %v1890_v39 }
 0x83b   : > { %1527 = vmatprep.subr.bf16.mxu1 %v2333_v60 }
 0x842   : > { %1528 = vmatpush3.bf16.xpose.msra.mxu1 %v1898_v40 }
 0x843   : > { %1529 = vmatprep.subr.bf16.mxu1 %v2333_v60 }
 0x84a   : > { %1530 = vmatpush3.bf16.xpose.msra.mxu1 %v1906_v41 }
 0x84b   : > { %1531 = vmatprep.subr.bf16.mxu1 %v2333_v60 }
 0x852   : > { %1532 = vmatpush3.bf16.xpose.msra.mxu1 %v1914_v42 }
 0x853   : > { %1533 = vmatprep.subr.bf16.mxu1 %v2333_v60 }
 0x85a   : > { %1534 = vmatpush3.bf16.xpose.msra.mxu1 %v1922_v43 }
 0x85b   : > { %1535 = vmatprep.subr.bf16.mxu1 %v2333_v60 }
 0x862   : > { %1536 = vmatpush3.bf16.xpose.msra.mxu1 %v1932_v46 }
 0x863   : > { %1561 = vmatprep.subr.bf16.mxu1 %v2333_v60 }
 0x8e9   : > { %v818_v34 = vpop.f32.mrf.mxu1 }
 0x8ea   : > { %v824_v3 = vmul.f32 %v818_v34, %v2241_v53 }
 0x8eb   : > { %v1499_v44 = vpop.f32.mrf.mxu1 }
 0x8ec   : > { %v825_v47 = vadd.f32 %v824_v3, %v2215_v45 }
 0x8ed   : > { %v821_v48 = vpop.f32.mrf.mxu1 }
 0x8ee   : > { %v826_v1 = vpack.c.bf16 %v825_v47, %v825_v47 }
 0x8ef   : > { %v1500_v57 = vpop.f32.mrf.mxu1 }
 0x8f0   : > { %1518 = vmatmul.mubr.bf16.vlgmr.msra.gmra.mxu0 %v826_v1 }
 0x8f1   : > { %1542 = vmatpush3.bf16.xpose.msra.mxu0 %v1868_v36  ;;  %1557 = vmatprep.mubr.msk.bf16.mxu0 %vm1743_vm0, %v2333_v60 }
 0x8f2   : > { %1543 = vmatprep.subr.bf16.mxu0 %v2333_v60 }
 0x8f9   : > { %1544 = vmatpush3.bf16.xpose.msra.mxu0 %v1882_v38 }
 0x8fa   : > { %1545 = vmatprep.subr.bf16.mxu0 %v2333_v60 }
 0x901   : > { %1546 = vmatpush3.bf16.xpose.msra.mxu0 %v1890_v39 }
 0x902   : > { %1547 = vmatprep.subr.bf16.mxu0 %v2333_v60 }
 0x909   : > { %1548 = vmatpush3.bf16.xpose.msra.mxu0 %v1898_v40 }
 0x90a   : > { %1549 = vmatprep.subr.bf16.mxu0 %v2333_v60 }
 0x911   : > { %1550 = vmatpush3.bf16.xpose.msra.mxu0 %v1906_v41 }
 0x912   : > { %1551 = vmatprep.subr.bf16.mxu0 %v2333_v60 }
 0x919   : > { %1552 = vmatpush3.bf16.xpose.msra.mxu0 %v1914_v42 }
 0x91a   : > { %1553 = vmatprep.subr.bf16.mxu0 %v2333_v60 }
 0x921   : > { %1554 = vmatpush3.bf16.xpose.msra.mxu0 %v1922_v43 }
 0x922   : > { %1555 = vmatprep.subr.bf16.mxu0 %v2333_v60 }
 0x929   : > { %1556 = vmatpush3.bf16.xpose.msra.mxu0 %v1932_v46 }
 0x9b0   : > { %v861_v58 = vpop.f32.mrf.mxu0 }
 0x9b1   : > { %v867_v2 = vmul.f32 %v861_v58, %v2241_v53 }
 0x9b2   : > { %v1519_v37 = vpop.f32.mrf.mxu0 }
 0x9b3   : > { %v868_v0 = vadd.f32 %v867_v2, %v2215_v45 }
 0x9b4   : > { %v864_v49 = vpop.f32.mrf.mxu0 }
 0x9b5   : > { %v869_v50 = vpack.c.bf16 %v868_v0, %v868_v0 }
 0x9b6   : > { %v1520_v51 = vpop.f32.mrf.mxu0 }
 0x9b7   : > { %1538 = vmatmul.mubr.bf16.vlgmr.msra.gmra.mxu1 %v869_v50 }
 0x9b8   : > { %1562 = vmatpush3.bf16.xpose.msra.mxu1 %v1868_v36  ;;  %1577 = vmatprep.mubr.msk.bf16.mxu1 %vm1743_vm0, %v2333_v60 }
 0x9b9   : > { %1563 = vmatprep.subr.bf16.mxu1 %v2333_v60 }
 0x9c0   : > { %1564 = vmatpush3.bf16.xpose.msra.mxu1 %v1882_v38 }
 0x9c1   : > { %1565 = vmatprep.subr.bf16.mxu1 %v2333_v60 }
 0x9c8   : > { %1566 = vmatpush3.bf16.xpose.msra.mxu1 %v1890_v39 }
 0x9c9   : > { %1567 = vmatprep.subr.bf16.mxu1 %v2333_v60 }
 0x9d0   : > { %1568 = vmatpush3.bf16.xpose.msra.mxu1 %v1898_v40 }
 0x9d1   : > { %1569 = vmatprep.subr.bf16.mxu1 %v2333_v60 }
 0x9d8   : > { %1570 = vmatpush3.bf16.xpose.msra.mxu1 %v1906_v41 }
 0x9d9   : > { %1571 = vmatprep.subr.bf16.mxu1 %v2333_v60 }
 0x9e0   : > { %1572 = vmatpush3.bf16.xpose.msra.mxu1 %v1914_v42 }
 0x9e1   : > { %1573 = vmatprep.subr.bf16.mxu1 %v2333_v60 }
 0x9e8   : > { %1574 = vmatpush3.bf16.xpose.msra.mxu1 %v1922_v43 }
 0x9e9   : > { %1575 = vmatprep.subr.bf16.mxu1 %v2333_v60 }
 0x9f0   : > { %1576 = vmatpush3.bf16.xpose.msra.mxu1 %v1932_v46 }
 0xa77   : > { %v904_v36 = vpop.f32.mrf.mxu1 }
 0xa78   : > { %v910_v38 = vmul.f32 %v904_v36, %v2241_v53 }
 0xa79   : > { %v1539_v39 = vpop.f32.mrf.mxu1 }
 0xa7a   : > { %v911_v40 = vadd.f32 %v910_v38, %v2215_v45 }
 0xa7b   : > { %v907_v41 = vpop.f32.mrf.mxu1 }
 0xa7c   : > { %v912_v52 = vpack.c.bf16 %v911_v40, %v911_v40 }
 0xa7d   : > { %v1540_v54 = vpop.f32.mrf.mxu1 }
 0xa7e   : > { %1558 = vmatmul.mubr.bf16.vlgmr.msra.gmra.mxu0 %v912_v52 }
 0xb3e   : > { %v947_v42 = vpop.f32.mrf.mxu0 }
 0xb3f   : > { %v953_v55 = vmul.f32 %v947_v42, %v2241_v53 }
 0xb40   : > { %v1559_v56 = vpop.f32.mrf.mxu0 }
 0xb41   : > { %v954_v43 = vadd.f32 %v953_v55, %v2215_v45 }
 0xb42   : > { %v950_v60 = vpop.f32.mrf.mxu0 }
 0xb43   : > { %v955_v61 = vpack.c.bf16 %v954_v43, %v954_v43 }
 0xb44   : > { %v1560_v46 = vpop.f32.mrf.mxu0 }
 0xb45   : > { %1578 = vmatmul.mubr.bf16.vlgmr.msra.gmra.mxu1 %v955_v61 }
 0xc05   : > { %v990_v62 = vpop.f32.mrf.mxu1 }
 0xc06   : > { %v996_v63 = vmul.f32 %v990_v62, %v2241_v53 }
 0xc07   : > { %v1579_v33 = vpop.f32.mrf.mxu1 }
 0xc08   : > { %v997_v34 = vadd.f32 %v996_v63, %v2215_v45  ;;  %124 = sbr.rel (!%p121_p8) target bundleno = 65 (0x41), region = 63 }
 0xc09   : > { %v993_v3 = vpop.f32.mrf.mxu1 }
 0xc0a   : > { %v1011_v44 = vadd.f32 %v997_v34, %v2154_v59  }
 0xc0b   : > { %v1580_v47 = vpop.f32.mrf.mxu1 }
 0xc0c   : > { %v2334_v0 = vmov %v1011_v44  ;;  %1013 = vst [vmem:[#allocation10] sm:$0xf] (%p121_p8), %v1011_v44 }
 0xc0d   :  { %1703 = shalt.err (!%p1700_p13)
}
 0xc0e   :  { %1023 = dma.vmem_to_hbm [thread:$0]  %s1021_s15, 64, %s2324_s5, [#allocation4]  }
 0xc0f   :  { %1726 = dma.done.wait [#allocation4], 64  }
 0xc10   :  { %1727 = vsyncadd [#allocation4], 4294967232 }
 0xc11   :  { %1027 = vsyncpa [#allocation3], 1 }
 0xc12   :  { %1028 = vsyncpa [#allocation6], 1 }
 0xc13   :  { %1029 = vsyncpa [#allocation9], 1 }
 0xc14   :  { %1030 = vsyncpa [#allocation4], 1 }

</bundles_post_ra>
